<compile_context>
chip_gen: v7x
topology: tpu7x:2x2x1
jax: 0.10.0
libtpu: 0.0.40
codegen_flags: <defaults>
</compile_context>

<pallas_src>
import functools

import jax
import jax.numpy as jnp
from jax.experimental import pallas as pl
from jax.experimental.pallas import tpu as pltpu

_LANE = 128


def _round_up(n, m):
    return ((n + m - 1) // m) * m


def _dqn_forward_kernel(x_ref, w1_ref, w2_ref, w3_ref, b_ref, o_ref):
    h1p = w1_ref.shape[1]
    h2p = w2_ref.shape[1]
    ap = w3_ref.shape[1]
    # Layer 1: (TB, D) @ (D, H1P) + (1, H1P) -> relu
    h1 = jnp.dot(x_ref[...], w1_ref[...], preferred_element_type=jnp.float32)
    h1 = jnp.maximum(h1 + b_ref[0:1, :h1p], 0.0)
    # Layer 2: (TB, H1P) @ (H1P, H2P) + (1, H2P) -> relu
    h2 = jnp.dot(h1, w2_ref[...], preferred_element_type=jnp.float32)
    h2 = jnp.maximum(h2 + b_ref[1:2, :h2p], 0.0)
    # Layer 3: (TB, H2P) @ (H2P, AP) + (1, AP) -> relu
    # NOTE: final ReLU matches the given PyTorch module (relu(fc3(x))), which
    # clamps Q-values to >= 0 — unusual for a DQN head, but it is the spec.
    h3 = jnp.dot(h2, w3_ref[...], preferred_element_type=jnp.float32)
    o_ref[...] = jnp.maximum(h3 + b_ref[2:3, :ap], 0.0).astype(o_ref.dtype)


def prepare_params(params):
    """One-time conversion of PyTorch-layout params to kernel layout.

    Weights (out_features, in_features) -> (in_padded, out_padded_to_128) f32;
    the three biases are packed into a single (3, max_out_padded) f32 array.
    Padded rows/cols are zero, so padded lanes carry exact zeros through every
    layer (relu(0) = 0).
    Call this once at init AND after every optimizer / target-network update —
    NOT per forward (otherwise the kernel silently uses stale weights).
    """
    def prep_w(w, in_pad):
        out_dim, in_dim = w.shape
        out_pad = _round_up(out_dim, _LANE)
        wt = jnp.zeros((in_pad, out_pad), jnp.float32)
        wt = wt.at[:in_dim, :out_dim].set(jnp.asarray(w, jnp.float32).T)
        return wt, out_pad

    input_dim = params["w1"].shape[1]
    w1, h1p = prep_w(params["w1"], input_dim)
    w2, h2p = prep_w(params["w2"], h1p)
    w3, a_p = prep_w(params["w3"], h2p)

    max_pad = max(h1p, h2p, a_p)
    biases = jnp.zeros((3, max_pad), jnp.float32)
    biases = biases.at[0, : params["b1"].shape[0]].set(jnp.asarray(params["b1"], jnp.float32))
    biases = biases.at[1, : params["b2"].shape[0]].set(jnp.asarray(params["b2"], jnp.float32))
    biases = biases.at[2, : params["b3"].shape[0]].set(jnp.asarray(params["b3"], jnp.float32))

    return {
        "w1": w1, "w2": w2, "w3": w3, "biases": biases,
        "n_actions": int(params["w3"].shape[0]),
    }


@functools.partial(jax.jit, static_argnames=("n_actions", "tb_max"))
def _dqn_forward_jit(x, w1, w2, w3, biases, *, n_actions, tb_max):
    B, d_in = x.shape
    a_pad = w3.shape[1]

    # Batch tile selection (all static under jit):
    #  * B < 512  -> one grid step covering the whole (8-rounded) batch.
    #  * B >= 512 -> exactly two steps so both v7x TensorCores get work
    #    ("parallel" axis); more steps would only add per-step overhead.
    #  * tb_max caps per-step VMEM for very large batches.
    if B >= 512:
        tb = _round_up(pl.cdiv(B, 2), 8)
    else:
        tb = _round_up(B, 8)
    tb = min(tb, max(8, _round_up(tb_max, 8)))
    num_steps = pl.cdiv(B, tb)

    const2 = lambda i: (0, 0)  # weights/biases resident in VMEM across steps
    out = pl.pallas_call(
        _dqn_forward_kernel,
        out_shape=jax.ShapeDtypeStruct((B, a_pad), jnp.float32),
        grid=(num_steps,),
        in_specs=[
            pl.BlockSpec((tb, d_in), lambda i: (i, 0)),
            pl.BlockSpec(w1.shape, const2),
            pl.BlockSpec(w2.shape, const2),
            pl.BlockSpec(w3.shape, const2),
            pl.BlockSpec(biases.shape, const2),
        ],
        out_specs=pl.BlockSpec((tb, a_pad), lambda i: (i, 0)),
        compiler_params=pltpu.CompilerParams(
            dimension_semantics=("parallel",)),
    )(x, w1, w2, w3, biases)

    # Fused into the same executable by jit; padded action lanes are exact 0s.
    return out[:, :n_actions]


def dqn_forward(x, prepared, *, tb_max=1024):
    """x: (B, input_dim) f32. prepared: output of prepare_params()."""
    return _dqn_forward_jit(
        x, prepared["w1"], prepared["w2"], prepared["w3"], prepared["biases"],
        n_actions=prepared["n_actions"], tb_max=int(tb_max))


def init_params(key, input_dim, fc1_dims, fc2_dims, n_actions):
    """Deterministic init; weight shapes mirror nn.Linear (out_features, in_features)."""
    ks = jax.random.split(key, 6)

    def lin(kw, kb, fan_in, fan_out):
        bound = 1.0 / jnp.sqrt(fan_in)
        w = jax.random.uniform(kw, (fan_out, fan_in), jnp.float32, -bound, bound)
        b = jax.random.uniform(kb, (fan_out,), jnp.float32, -bound, bound)
        return w, b

    w1, b1 = lin(ks[0], ks[1], input_dim, fc1_dims)
    w2, b2 = lin(ks[2], ks[3], fc1_dims, fc2_dims)
    w3, b3 = lin(ks[4], ks[5], fc2_dims, n_actions)
    return {"w1": w1, "b1": b1, "w2": w2, "b2": b2, "w3": w3, "b3": b3}


def dqn_forward_ref(x, p):
    h = jnp.maximum(x @ p["w1"].T + p["b1"], 0.0)
    h = jnp.maximum(h @ p["w2"].T + p["b2"], 0.0)
    # Final ReLU matches the given PyTorch module (relu(fc3(x))).
    return jnp.maximum(h @ p["w3"].T + p["b3"], 0.0)


if __name__ == "__main__":
    key = jax.random.PRNGKey(0)
    k_param, k_x1, k_x2, k_x3 = jax.random.split(key, 4)

    # LunarLander-style small shapes: state dim 8, hidden 32/32, 4 actions.
    input_dim, fc1_dims, fc2_dims, n_actions = 8, 32, 32, 4

    params = init_params(k_param, input_dim, fc1_dims, fc2_dims, n_actions)
    prepared = prepare_params(params)  # one-time layout conversion

    # Case 1: tiny acting batch -> single grid step, partial (8-row) tile.
    x_small = jax.random.normal(k_x1, (8, input_dim), jnp.float32)
    out_small = jax.block_until_ready(dqn_forward(x_small, prepared))
    ref_small = dqn_forward_ref(x_small, params)
    assert out_small.shape == (8, n_actions)
    assert jnp.allclose(out_small, ref_small, atol=1e-5, rtol=1e-5)

    # Case 2: replay-buffer batch with a small tile cap -> 2 steps, the second
    # one a partial block (rows 128..199 valid, 200..255 masked on store).
    x_big = jax.random.normal(k_x2, (200, input_dim), jnp.float32)
    out_big = jax.block_until_ready(dqn_forward(x_big, prepared, tb_max=128))
    ref_big = dqn_forward_ref(x_big, params)
    assert out_big.shape == (200, n_actions)
    assert jnp.allclose(out_big, ref_big, atol=1e-5, rtol=1e-5)

    # Case 3: large batch (>=512) -> exactly 2 "parallel" steps (both v7x TCs).
    x_huge = jax.random.normal(k_x3, (600, input_dim), jnp.float32)
    out_huge = jax.block_until_ready(dqn_forward(x_huge, prepared))
    ref_huge = dqn_forward_ref(x_huge, params)
    assert out_huge.shape == (600, n_actions)
    assert jnp.allclose(out_huge, ref_huge, atol=1e-5, rtol=1e-5)

    print("KERNEL_OK")
</pallas_src>

<mosaic_0001>
module attributes {stable_mosaic.version = 11 : i64} {
  func.func @_dqn_forward_kernel(%arg0: i32, %arg1: memref<8x8xf32, #tpu.memory_space<vmem>>, %arg2: memref<8x128xf32, #tpu.memory_space<vmem>>, %arg3: memref<128x128xf32, #tpu.memory_space<vmem>>, %arg4: memref<128x128xf32, #tpu.memory_space<vmem>>, %arg5: memref<3x128xf32, #tpu.memory_space<vmem>>, %arg6: memref<8x128xf32, #tpu.memory_space<vmem>>) attributes {dimension_semantics = [#tpu.dimension_semantics<parallel>], iteration_bounds = array<i64: 1>, scalar_prefetch = 0 : i64, scratch_operands = 0 : i64, tpu.core_type = #tpu.core_type<tc>, window_params = [{transform_indices = @transform_0, window_bounds = array<i64: 8, 8>}, {pipeline_mode = #tpu.pipeline_mode<synchronous>, transform_indices = @transform_1, window_bounds = array<i64: 8, 128>}, {pipeline_mode = #tpu.pipeline_mode<synchronous>, transform_indices = @transform_2, window_bounds = array<i64: 128, 128>}, {pipeline_mode = #tpu.pipeline_mode<synchronous>, transform_indices = @transform_3, window_bounds = array<i64: 128, 128>}, {pipeline_mode = #tpu.pipeline_mode<synchronous>, transform_indices = @transform_4, window_bounds = array<i64: 3, 128>}, {transform_indices = @transform_5, window_bounds = array<i64: 8, 128>}]} {
    %c0 = arith.constant 0 : index
    %c0_0 = arith.constant 0 : index
    %0 = vector.load %arg1[%c0, %c0_0] : memref<8x8xf32, #tpu.memory_space<vmem>>, vector<8x8xf32>
    %c0_1 = arith.constant 0 : index
    %c0_2 = arith.constant 0 : index
    %1 = vector.load %arg2[%c0_1, %c0_2] : memref<8x128xf32, #tpu.memory_space<vmem>>, vector<8x128xf32>
    %cst = arith.constant dense<0.000000e+00> : vector<8x128xf32>
    %2 = tpu.matmul %0, %1, %cst {dimension_numbers = #tpu.dot_dimension_numbers<[1], [0], [0], [1], [0, 0, 1, 1], [], []>} : vector<8x8xf32>, vector<8x128xf32>, vector<8x128xf32> -> vector<8x128xf32>
    %c0_3 = arith.constant 0 : index
    %c0_4 = arith.constant 0 : index
    %3 = vector.load %arg5[%c0_3, %c0_4] : memref<3x128xf32, #tpu.memory_space<vmem>>, vector<1x128xf32>
    %4 = vector.broadcast %3 : vector<1x128xf32> to vector<8x128xf32>
    %5 = arith.addf %2, %4 : vector<8x128xf32>
    %cst_5 = arith.constant 0.000000e+00 : f32
    %6 = vector.broadcast %cst_5 : f32 to vector<8x128xf32>
    %7 = arith.maximumf %5, %6 : vector<8x128xf32>
    %c0_6 = arith.constant 0 : index
    %c0_7 = arith.constant 0 : index
    %8 = vector.load %arg3[%c0_6, %c0_7] : memref<128x128xf32, #tpu.memory_space<vmem>>, vector<128x128xf32>
    %cst_8 = arith.constant dense<0.000000e+00> : vector<8x128xf32>
    %9 = tpu.matmul %7, %8, %cst_8 {dimension_numbers = #tpu.dot_dimension_numbers<[1], [0], [0], [1], [0, 0, 1, 1], [], []>} : vector<8x128xf32>, vector<128x128xf32>, vector<8x128xf32> -> vector<8x128xf32>
    %c1 = arith.constant 1 : index
    %c0_9 = arith.constant 0 : index
    %10 = vector.load %arg5[%c1, %c0_9] : memref<3x128xf32, #tpu.memory_space<vmem>>, vector<1x128xf32>
    %11 = vector.broadcast %10 : vector<1x128xf32> to vector<8x128xf32>
    %12 = arith.addf %9, %11 : vector<8x128xf32>
    %cst_10 = arith.constant 0.000000e+00 : f32
    %13 = vector.broadcast %cst_10 : f32 to vector<8x128xf32>
    %14 = arith.maximumf %12, %13 : vector<8x128xf32>
    %c0_11 = arith.constant 0 : index
    %c0_12 = arith.constant 0 : index
    %15 = vector.load %arg4[%c0_11, %c0_12] : memref<128x128xf32, #tpu.memory_space<vmem>>, vector<128x128xf32>
    %cst_13 = arith.constant dense<0.000000e+00> : vector<8x128xf32>
    %16 = tpu.matmul %14, %15, %cst_13 {dimension_numbers = #tpu.dot_dimension_numbers<[1], [0], [0], [1], [0, 0, 1, 1], [], []>} : vector<8x128xf32>, vector<128x128xf32>, vector<8x128xf32> -> vector<8x128xf32>
    %c2 = arith.constant 2 : index
    %c0_14 = arith.constant 0 : index
    %17 = vector.load %arg5[%c2, %c0_14] : memref<3x128xf32, #tpu.memory_space<vmem>>, vector<1x128xf32>
    %18 = vector.broadcast %17 : vector<1x128xf32> to vector<8x128xf32>
    %19 = arith.addf %16, %18 : vector<8x128xf32>
    %cst_15 = arith.constant 0.000000e+00 : f32
    %20 = vector.broadcast %cst_15 : f32 to vector<8x128xf32>
    %21 = arith.maximumf %19, %20 : vector<8x128xf32>
    %c0_16 = arith.constant 0 : index
    %c0_17 = arith.constant 0 : index
    %22 = vector.load %arg6[%c0_16, %c0_17] : memref<8x128xf32, #tpu.memory_space<vmem>>, vector<8x128xf32>
    tpu.vector_store %arg6[%c0_16, %c0_17], %21 {strides = array<i32>} : memref<8x128xf32, #tpu.memory_space<vmem>>, vector<8x128xf32>,
    return
  }
  func.func @transform_0(%arg0: i32) -> (i32, i32) {
    %c0_i32 = arith.constant 0 : i32
    %c0_i32_0 = arith.constant 0 : i32
    return %arg0, %c0_i32 : i32, i32
  }
  func.func @transform_1(%arg0: i32) -> (i32, i32) {
    %c0_i32 = arith.constant 0 : i32
    %c0_i32_0 = arith.constant 0 : i32
    %c0_i32_1 = arith.constant 0 : i32
    return %c0_i32, %c0_i32_0 : i32, i32
  }
  func.func @transform_2(%arg0: i32) -> (i32, i32) {
    %c0_i32 = arith.constant 0 : i32
    %c0_i32_0 = arith.constant 0 : i32
    %c0_i32_1 = arith.constant 0 : i32
    return %c0_i32, %c0_i32_0 : i32, i32
  }
  func.func @transform_3(%arg0: i32) -> (i32, i32) {
    %c0_i32 = arith.constant 0 : i32
    %c0_i32_0 = arith.constant 0 : i32
    %c0_i32_1 = arith.constant 0 : i32
    return %c0_i32, %c0_i32_0 : i32, i32
  }
  func.func @transform_4(%arg0: i32) -> (i32, i32) {
    %c0_i32 = arith.constant 0 : i32
    %c0_i32_0 = arith.constant 0 : i32
    %c0_i32_1 = arith.constant 0 : i32
    return %c0_i32, %c0_i32_0 : i32, i32
  }
  func.func @transform_5(%arg0: i32) -> (i32, i32) {
    %c0_i32 = arith.constant 0 : i32
    %c0_i32_0 = arith.constant 0 : i32
    return %arg0, %c0_i32 : i32, i32
  }
}

</mosaic_0001>

<bundles_post_ra>
// kernel: _dqn_forward_jit.1
= control target key start
LH: loop header
LB: loop body
LE: loop exit
PB: predicated region body
PF: predicated region fallthrough
CT: control target
= control target key end

     0   :  { %10 = vsyncpa [#allocation3], 0  ;;  %s729_s0 = inlined_call_operand.hbm [shape: f32[8,8], index: 0, kind: input, shape index: {}]   ;;  %s730_s1 = inlined_call_operand.hbm [shape: f32[8,128], index: 1, kind: input, shape index: {}]   ;;  %s731_s2 = inlined_call_operand.hbm [shape: f32[128,128], index: 2, kind: input, shape index: {}]   ;;  %s732_s3 = inlined_call_operand.hbm [shape: f32[128,128], index: 3, kind: input, shape index: {}]   ;;  %s733_s4 = inlined_call_operand.vmem [shape: f32[3,128], index: 4, kind: input, shape index: {}]   ;;  %s734_s5 = inlined_call_operand.vmem [shape: f32[8,128], index: 5, kind: output, shape index: {}]  }
   0x1   :  { %11 = vsyncpa [#allocation5], 0 }
   0x2   :  { %12 = vsyncpa [#allocation8], 0  ;;  %s611_s18 = smov [#allocation4]   ;;  %s612_s20 = smov [#allocation2]  }
   0x3   :  { %s29_s19 = sshll.u32 %s611_s18, 4  ;;  %s19_s21 = sshll.u32 %s612_s20, 4  ;;  %s30_s19 = int_to_ptr.vmem [resolvable:$true] %s29_s19  ;;  %s20_s21 = int_to_ptr.vmem [resolvable:$true] %s19_s21 }
   0x4   :  { %s517_s24 = scalar_lea.hbm %s730_s1, 128 }
   0x5   :  { %p518_p0 = scmp.ne.s32.totalorder %s730_s1, %s517_s24  ;;  %p521_p1 = scmp.lt.u32.totalorder %s517_s24, %s730_s1 }
   0x7   :  { %p523_p2 = pnand %p521_p1, %p518_p0 }
   0x9   :  { %526 = shalt.err (!%p523_p2)
}
   0xa   :  { %s527_s29 = scalar_lea.vmem %s30_s19, 128  ;;  %p532_p4 = scmp.lt.s32.totalorder %s30_s19, %s30_s19 }
   0xb   :  { %p528_p3 = scmp.ne.s32.totalorder %s30_s19, %s527_s29  ;;  %p533_p5 = scmp.lt.s32.totalorder %s527_s29, %s527_s29 }
   0xd   :  { %p534_p6 = por %p533_p5, %p532_p4 }
   0xf   :  { %p535_p7 = pnand %p534_p6, %p528_p3 }
  0x11   :  { %538 = shalt.err (!%p535_p7)
}
  0x12   :  { %32 = dma.hbm_to_vmem [thread:$0]  %s730_s1, 128, %s30_s19, [#allocation5]  }
  0x13   :  { %s539_s9 = scalar_lea.hbm %s729_s0, 128 }
  0x14   :  { %p540_p8 = scmp.ne.s32.totalorder %s729_s0, %s539_s9  ;;  %p543_p9 = scmp.lt.u32.totalorder %s539_s9, %s729_s0 }
  0x16   :  { %p545_p10 = pnand %p543_p9, %p540_p8 }
  0x18   :  { %548 = shalt.err (!%p545_p10)
}
  0x19   :  { %s549_s14 = scalar_lea.vmem %s20_s21, 128  ;;  %p554_p12 = scmp.lt.s32.totalorder %s20_s21, %s20_s21 }
  0x1a   :  { %p550_p11 = scmp.ne.s32.totalorder %s20_s21, %s549_s14  ;;  %p555_p13 = scmp.lt.s32.totalorder %s549_s14, %s549_s14 }
  0x1c   :  { %p556_p0 = por %p555_p13, %p554_p12 }
  0x1e   :  { %p557_p1 = pnand %p556_p0, %p550_p11 }
  0x20   :  { %560 = shalt.err (!%p557_p1)
}
  0x21   :  { %22 = dma.hbm_to_vmem [thread:$0]  %s729_s0, 128, %s20_s21, [#allocation3]  }
  0x22   :  { %s613_s16 = smov [#allocation6]   ;;  %s561_s20 = scalar_lea.hbm %s731_s2, 2048 }
  0x23   :  { %s38_s17 = sshll.u32 %s613_s16, 4  ;;  %p562_p2 = scmp.ne.s32.totalorder %s731_s2, %s561_s20  ;;  %s39_s17 = int_to_ptr.vmem [resolvable:$true] %s38_s17 }
  0x24   :  { %p565_p3 = scmp.lt.u32.totalorder %s561_s20, %s731_s2 }
  0x26   :  { %p567_p4 = pnand %p565_p3, %p562_p2 }
  0x28   :  { %570 = shalt.err (!%p567_p4)
}
  0x29   :  { %s571_s26 = scalar_lea.vmem %s39_s17, 2048  ;;  %p576_p6 = scmp.lt.s32.totalorder %s39_s17, %s39_s17 }
  0x2a   :  { %p572_p5 = scmp.ne.s32.totalorder %s39_s17, %s571_s26  ;;  %p577_p7 = scmp.lt.s32.totalorder %s571_s26, %s571_s26 }
  0x2c   :  { %p578_p8 = por %p577_p7, %p576_p6 }
  0x2e   :  { %p579_p9 = pnand %p578_p8, %p572_p5 }
  0x30   :  { %582 = shalt.err (!%p579_p9)
}
  0x31   :  { %s614_s0 = smov 128   ;;  %s615_s21 = smov 8  }
  0x32   :  { %44 = dma.hbm_to_vmem [thread:$0]  %s731_s2, 2048, %s39_s17, [#allocation5], %s614_s0, %s614_s0, %s615_s21  }
  0x33   :  { %s616_s29 = smov [#allocation7]   ;;  %s583_s8 = scalar_lea.hbm %s732_s3, 2048 }
  0x34   :  { %s50_s30 = sshll.u32 %s616_s29, 4  ;;  %p584_p10 = scmp.ne.s32.totalorder %s732_s3, %s583_s8  ;;  %s51_s30 = int_to_ptr.vmem [resolvable:$true] %s50_s30 }
  0x35   :  { %p587_p11 = scmp.lt.u32.totalorder %s583_s8, %s732_s3 }
  0x37   :  { %p589_p12 = pnand %p587_p11, %p584_p10 }
  0x39   :  { %592 = shalt.err (!%p589_p12)
}
  0x3a   :  { %s593_s13 = scalar_lea.vmem %s51_s30, 2048  ;;  %p598_p0 = scmp.lt.s32.totalorder %s51_s30, %s51_s30 }
  0x3b   :  { %p594_p13 = scmp.ne.s32.totalorder %s51_s30, %s593_s13  ;;  %p599_p1 = scmp.lt.s32.totalorder %s593_s13, %s593_s13 }
  0x3d   :  { %p600_p2 = por %p599_p1, %p598_p0 }
  0x3f   :  { %p601_p3 = pnand %p600_p2, %p594_p13 }
  0x41   :  { %604 = shalt.err (!%p601_p3)
}
  0x42   :  { %56 = dma.hbm_to_vmem [thread:$0]  %s732_s3, 2048, %s51_s30, [#allocation8], %s614_s0, %s614_s0, %s615_s21  }
  0x43   :  { %605 = dma.done.wait [#allocation3], 128  }
  0x44   :  { %606 = vsyncadd [#allocation3], 4294967168 }
  0x45   :  { %607 = dma.done.wait [#allocation5], 2176  }
  0x46   :  { %608 = vsyncadd [#allocation5], 4294965120 }
  0x47   :  { %609 = dma.done.wait [#allocation8], 2048  }
  0x48   :  { %610 = vsyncadd [#allocation8], 4294965248  ;;  %v617_v0 = vmov 0.0   ;;  %vm618_vm0 = vmmov 0   ;;  %v619_v1 = vmov 0.0|0.0   ;;  %vm78_vm1 = vcmask 64512  }
  0x49   :  { %385 = vmatprep.subr.mxu0 %v617_v0  ;;  %387 = vmatprep.mubr.msk.f32.mxu0 %vm618_vm0, %v617_v0  ;;  %v72_v2 = vld [vmem:[#allocation4] sm:$0xff]  ;;  %v71_v3 = vld [vmem:[#allocation2] sm:$0xff]  ;;  %v153_v4 = vld [vmem:[#allocation6] sm:$0xff] }
  0x4a   :  { %460 = vmatprep.subr.bf16.mxu1 %v619_v1  ;;  %422 = vmatprep.mubr.msk.f32.mxu1 %vm618_vm0, %v617_v0  ;;  %v154_v5 = vld [vmem:[#allocation6 + $0x8] sm:$0xff]  ;;  %v155_v6 = vld [vmem:[#allocation6 + $0x10] sm:$0xff]  ;;  %v156_v7 = vld [vmem:[#allocation6 + $0x18] sm:$0xff] }
  0x4b   :  { %386 = vmatpush3.msra.mxu0 %v72_v2  ;;  %v461_v8 = vpack.c.bf16 %v154_v5, %v153_v4  ;;  %v464_v9 = vpack.c.bf16 %v156_v7, %v155_v6  ;;  %v157_v10 = vld [vmem:[#allocation6 + $0x20] sm:$0xff]  ;;  %v158_v11 = vld [vmem:[#allocation6 + $0x28] sm:$0xff]  ;;  %v159_v13 = vld [vmem:[#allocation6 + $0x30] sm:$0xff] }
  0x4c   :  { %388 = vmatmul.mubr.msk.f32.vlgmr.msra.gmra.mrb[0].mxu0 %vm78_vm1, %v71_v3  ;;  %484 = vmatprep.subr.bf16.mxu0 %v619_v1  ;;  %v467_v12 = vpack.c.bf16 %v158_v11, %v157_v10  ;;  %v160_v14 = vld [vmem:[#allocation6 + $0x38] sm:$0xff]  ;;  %v161_v16 = vld [vmem:[#allocation6 + $0x40] sm:$0xff]  ;;  %v162_v17 = vld [vmem:[#allocation6 + $0x48] sm:$0xff] }
  0x4d   :  { %457 = vmatprep.mubr.msk.f32.mxu0 %vm618_vm0, %v617_v0  ;;  %462 = vmatpush3.bf16.msra.mxu1 %v461_v8  ;;  %v470_v15 = vpack.c.bf16 %v160_v14, %v159_v13  ;;  %v473_v18 = vpack.c.bf16 %v162_v17, %v161_v16  ;;  %v163_v19 = vld [vmem:[#allocation6 + $0x50] sm:$0xff]  ;;  %v164_v20 = vld [vmem:[#allocation6 + $0x58] sm:$0xff]  ;;  %v165_v22 = vld [vmem:[#allocation6 + $0x60] sm:$0xff] }
  0x4e   :  { %463 = vmatprep.subr.bf16.mxu1 %v619_v1  ;;  %v476_v21 = vpack.c.bf16 %v164_v20, %v163_v19  ;;  %v166_v23 = vld [vmem:[#allocation6 + $0x68] sm:$0xff]  ;;  %v167_v25 = vld [vmem:[#allocation6 + $0x70] sm:$0xff]  ;;  %v168_v26 = vld [vmem:[#allocation6 + $0x78] sm:$0xff] }
  0x4f   :  { %v479_v24 = vpack.c.bf16 %v166_v23, %v165_v22  ;;  %v482_v27 = vpack.c.bf16 %v168_v26, %v167_v25  ;;  %v245_v28 = vld [vmem:[#allocation7] sm:$0xff]  ;;  %v246_v29 = vld [vmem:[#allocation7 + $0x8] sm:$0xff]  ;;  %v247_v30 = vld [vmem:[#allocation7 + $0x10] sm:$0xff] }
  0x50   :  { %v485_v31 = vpack.c.bf16 %v246_v29, %v245_v28  ;;  %v248_v32 = vld [vmem:[#allocation7 + $0x18] sm:$0xff]  ;;  %v249_v34 = vld [vmem:[#allocation7 + $0x20] sm:$0xff]  ;;  %v250_v35 = vld [vmem:[#allocation7 + $0x28] sm:$0xff] }
  0x51   :  { %465 = vmatpush3.bf16.msra.mxu1 %v464_v9  ;;  %v488_v33 = vpack.c.bf16 %v248_v32, %v247_v30  ;;  %v491_v36 = vpack.c.bf16 %v250_v35, %v249_v34  ;;  %v251_v37 = vld [vmem:[#allocation7 + $0x30] sm:$0xff]  ;;  %v252_v38 = vld [vmem:[#allocation7 + $0x38] sm:$0xff]  ;;  %v253_v40 = vld [vmem:[#allocation7 + $0x40] sm:$0xff] }
  0x52   :  { %466 = vmatprep.subr.bf16.mxu1 %v619_v1  ;;  %486 = vmatpush3.bf16.msra.mxu0 %v485_v31  ;;  %v494_v39 = vpack.c.bf16 %v252_v38, %v251_v37  ;;  %v254_v41 = vld [vmem:[#allocation7 + $0x48] sm:$0xff]  ;;  %v255_v43 = vld [vmem:[#allocation7 + $0x50] sm:$0xff]  ;;  %v256_v44 = vld [vmem:[#allocation7 + $0x58] sm:$0xff] }
  0x53   :  { %487 = vmatprep.subr.bf16.mxu0 %v619_v1  ;;  %v497_v42 = vpack.c.bf16 %v254_v41, %v253_v40  ;;  %v500_v45 = vpack.c.bf16 %v256_v44, %v255_v43  ;;  %v257_v46 = vld [vmem:[#allocation7 + $0x60] sm:$0xff]  ;;  %v258_v47 = vld [vmem:[#allocation7 + $0x68] sm:$0xff]  ;;  %v345_v49 = vld [vmem:[%s733_s4] ss:$0 sm:$0xff] }
  0x54   :  { %v503_v48 = vpack.c.bf16 %v258_v47, %v257_v46  ;;  %v259_v54 = vld [vmem:[#allocation7 + $0x70] sm:$0xff]  ;;  %v260_v55 = vld [vmem:[#allocation7 + $0x78] sm:$0xff] }
  0x55   :  { %468 = vmatpush3.bf16.msra.mxu1 %v467_v12  ;;  %v506_v56 = vpack.c.bf16 %v260_v55, %v259_v54  ;;  %v347_v57 = vld [vmem:[%s733_s4 + $0x1] ss:$0 sm:$0xff]  ;;  %v348_v62 = vld [vmem:[%s733_s4 + $0x2] ss:$0 sm:$0xff] }
  0x56   :  { %469 = vmatprep.subr.bf16.mxu1 %v619_v1  ;;  %489 = vmatpush3.bf16.msra.mxu0 %v488_v33 }
  0x57   :  { %490 = vmatprep.subr.bf16.mxu0 %v619_v1 }
  0x59   :  { %471 = vmatpush3.bf16.msra.mxu1 %v470_v15 }
  0x5a   :  { %472 = vmatprep.subr.bf16.mxu1 %v619_v1  ;;  %492 = vmatpush3.bf16.msra.mxu0 %v491_v36 }
  0x5b   :  { %493 = vmatprep.subr.bf16.mxu0 %v619_v1 }
  0x5d   :  { %474 = vmatpush3.bf16.msra.mxu1 %v473_v18 }
  0x5e   :  { %475 = vmatprep.subr.bf16.mxu1 %v619_v1  ;;  %495 = vmatpush3.bf16.msra.mxu0 %v494_v39 }
  0x5f   :  { %496 = vmatprep.subr.bf16.mxu0 %v619_v1 }
  0x61   :  { %477 = vmatpush3.bf16.msra.mxu1 %v476_v21 }
  0x62   :  { %478 = vmatprep.subr.bf16.mxu1 %v619_v1  ;;  %498 = vmatpush3.bf16.msra.mxu0 %v497_v42 }
  0x63   :  { %499 = vmatprep.subr.bf16.mxu0 %v619_v1 }
  0x65   :  { %480 = vmatpush3.bf16.msra.mxu1 %v479_v24 }
  0x66   :  { %481 = vmatprep.subr.bf16.mxu1 %v619_v1  ;;  %501 = vmatpush3.bf16.msra.mxu0 %v500_v45 }
  0x67   :  { %502 = vmatprep.subr.bf16.mxu0 %v619_v1 }
  0x69   :  { %483 = vmatpush3.bf16.msra.mxu1 %v482_v27 }
  0x6a   :  { %504 = vmatpush3.bf16.msra.mxu0 %v503_v48 }
  0x6b   :  { %505 = vmatprep.subr.bf16.mxu0 %v619_v1 }
  0x6e   :  { %507 = vmatpush3.bf16.msra.mxu0 %v506_v56 }
 0x11f   :  { %v148_v50 = vpop.f32.mrb[0].mxu0 }
 0x120   :  { %v149_v51 = vadd.f32 %v345_v49, %v148_v50  ;;  %v389_v52 = vpop.f32.mrb[1].mxu0 }
 0x122   :  { %v152_v53 = vmax.f32 %v149_v51, 0.0 }
 0x124   :  { %423 = vmatmul.mubr.f32.vlgmr.msra.gmra.mrb[0].mxu1 %v152_v53 }
 0x1f7   :  { %v240_v58 = vpop.f32.mrb[0].mxu1 }
 0x1f8   :  { %v241_v59 = vadd.f32 %v347_v57, %v240_v58  ;;  %v424_v60 = vpop.f32.mrb[1].mxu1 }
 0x1fa   :  { %v244_v61 = vmax.f32 %v241_v59, 0.0 }
 0x1fc   :  { %458 = vmatmul.mubr.f32.vlgmr.msra.gmra.mrb[2].mxu0 %v244_v61 }
 0x2cf   :  { %v332_v63 = vpop.f32.mrb[2].mxu0 }
 0x2d0   :  { %v333_v0 = vadd.f32 %v348_v62, %v332_v63  ;;  %v459_v1 = vpop.f32.mrb[3].mxu0 }
 0x2d2   :  { %v336_v2 = vmax.f32 %v333_v0, 0.0 }
 0x2d4   :  { %337 = vst [vmem:[%s734_s5] sm:$0xff] %v336_v2 }
 0x2d5   :  { %342 = vsyncpa [#allocation3], 1 }
 0x2d6   :  { %343 = vsyncpa [#allocation5], 1 }
 0x2d7   :  { %344 = vsyncpa [#allocation8], 1 }

</bundles_post_ra>
